<compile_context>
chip_gen: v5e
topology: v5e:2x2
jax: 0.10.0
libtpu: 0.0.40
codegen_flags: <defaults>
</compile_context>

<pallas_src>
import numpy as np
import jax
import jax.numpy as jnp
from jax.experimental import pallas as pl
from jax.experimental.pallas import tpu as pltpu

EPS = 1e-5


# ----------------------------- Pallas kernel ------------------------------- #
def _fused_block_kernel(x_ref, s_ref, b1_ref, b2_ref, pm_ref,
                        cb1_ref, g1_ref, be1_ref,
                        cb2_ref, g2_ref, be2_ref,
                        o_ref):
    """Fused (conv3x3 + BN + ReLU) x 2 on a lane-dense (N*H, W*C) slab.

    x_ref  : (NH, W*Cin)        input slab
    s_ref  : (KH, NH, NH)       row-shift matrices (vertical taps + V padding)
    b1_ref : (KH, W*Cin,  W*Co) banded conv1 weights (horizontal taps + H padding)
    b2_ref : (KH, W*Co,   W*Co) banded conv2 weights
    pm_ref : (W*Co, W*Co)       per-channel mean projection (already / (N*H*W))
    cb*/g*/be* : (1, W*Co)      conv bias / BN gamma / BN beta, tiled over W
    o_ref  : (NH, W*Co)         output slab
    """
    kh = s_ref.shape[0]
    nh = x_ref.shape[0]
    wcout = o_ref.shape[1]
    f32 = jnp.float32

    pm = pm_ref[...]

    def conv_bn_relu(inp, band_ref, conv_bias, gamma, beta):
        # Convolution: 3 tiny shift matmuls + 3 banded weight matmuls (all MXU).
        acc = jnp.zeros((nh, wcout), f32)
        for k in range(kh):  # static unroll
            shifted = jnp.dot(s_ref[k], inp, preferred_element_type=f32)
            acc = acc + jnp.dot(shifted, band_ref[k], preferred_element_type=f32)
        acc = acc + conv_bias

        # BatchNorm2d (training mode): biased batch stats over (N, H, W).
        col_sum = jnp.sum(acc, axis=0, keepdims=True)                  # (1, W*Co)
        mean_lane = jnp.dot(col_sum, pm, preferred_element_type=f32)   # per-ch mean
        centered = acc - mean_lane
        sq_sum = jnp.sum(centered * centered, axis=0, keepdims=True)
        var_lane = jnp.dot(sq_sum, pm, preferred_element_type=f32)     # per-ch var
        y = centered * jax.lax.rsqrt(var_lane + EPS) * gamma + beta
        return jnp.maximum(y, 0.0)                                      # ReLU

    y1 = conv_bn_relu(x_ref[...].astype(f32), b1_ref,
                      cb1_ref[...], g1_ref[...], be1_ref[...])
    y2 = conv_bn_relu(y1, b2_ref,
                      cb2_ref[...], g2_ref[...], be2_ref[...])
    o_ref[...] = y2.astype(o_ref.dtype)


# --------------------------- wrapper helpers -------------------------------- #
def _build_shift_mats(n, h, kh):
    """S[k, r, r'] = 1 iff r' = r + (k - kh//2) and both rows are in the same image."""
    nh = n * h
    r = np.arange(nh)
    s = np.zeros((kh, nh, nh), np.float32)
    for k in range(kh):
        d = k - kh // 2
        rp = r + d
        ok = (rp >= 0) & (rp < nh) & ((r // h) == (rp // h))
        s[k, r[ok], rp[ok]] = 1.0
    return jnp.asarray(s)


def _build_band_weights(w_hwio, w_dim):
    """(KH, KW, Ci, Co) conv weight -> (KH, W*Ci, W*Co) banded matrices.

    band[k, wi*Ci+ci, wo*Co+co] = w[k, wi-wo+pad, ci, co]  (0 outside the band),
    which folds the horizontal taps + horizontal zero padding into one matmul.
    """
    kh, kw, cin, cout = w_hwio.shape
    pad = kw // 2
    sel = np.zeros((w_dim, w_dim, kw), np.float32)
    for kx in range(kw):
        for wo in range(w_dim):
            wi = wo + kx - pad
            if 0 <= wi < w_dim:
                sel[wi, wo, kx] = 1.0
    band = jnp.einsum('kxic,vux->kviuc', w_hwio, jnp.asarray(sel))
    return band.reshape(kh, w_dim * cin, w_dim * cout)


def _build_channel_proj(w_dim, c, n_elems):
    """(W*C, W*C): right-multiplying a (1, W*C) lane row-sum by this yields the
    per-channel mean broadcast back over all W*C lanes."""
    idx = np.arange(w_dim * c) % c
    p = (idx[:, None] == idx[None, :]).astype(np.float32) / float(n_elems)
    return jnp.asarray(p)


def conv2d_block_forward(x_nchw, params):
    """Equivalent of Conv2dBlock.forward (input/output in PyTorch NCHW layout)."""
    n, cin, h, w = x_nchw.shape
    kh, kw, _, cout = params["w1"].shape
    nh, wcout = n * h, w * cout

    # NCHW -> NHWC -> lane-dense slab (N*H, W*Cin).
    x_slab = jnp.transpose(x_nchw, (0, 2, 3, 1)).reshape(nh, w * cin)

    s_mats = _build_shift_mats(n, h, kh)
    b1 = _build_band_weights(params["w1"], w)
    b2 = _build_band_weights(params["w2"], w)
    pm = _build_channel_proj(w, cout, n * h * w)

    def lane(v):  # per-channel (Cout,) vector -> (1, W*Cout) lane vector
        return jnp.tile(v, w).reshape(1, wcout)

    vmem = pl.BlockSpec(memory_space=pltpu.MemorySpace.VMEM)

    wcin = w * cin
    flops = 2 * kh * nh * (nh * wcin + wcin * wcout +      # stage-1 shift + band
                           nh * wcout + wcout * wcout)      # stage-2 shift + band
    flops += 4 * 2 * wcout * wcout                          # BN stat projections
    bytes_accessed = int(sum(int(np.prod(a.shape)) * a.dtype.itemsize
                             for a in (x_slab, s_mats, b1, b2, pm))
                         + nh * wcout * x_nchw.dtype.itemsize)
    cost = pl.CostEstimate(flops=int(flops), transcendentals=2 * wcout,
                           bytes_accessed=bytes_accessed)

    out_slab = pl.pallas_call(
        _fused_block_kernel,
        out_shape=jax.ShapeDtypeStruct((nh, wcout), x_nchw.dtype),
        in_specs=[vmem] * 11,
        out_specs=vmem,
        cost_estimate=cost,
    )(x_slab, s_mats, b1, b2, pm,
      lane(params["b1"]), lane(params["g1"]), lane(params["beta1"]),
      lane(params["b2"]), lane(params["g2"]), lane(params["beta2"]))

    # (N*H, W*Cout) -> (N, H, W, Cout) -> NCHW
    return jnp.transpose(out_slab.reshape(n, h, w, cout), (0, 3, 1, 2))


# ---------------- pure-JAX reference for correctness checking --------------- #
def _ref_stage(x_nhwc, w_hwio, b, gamma, beta):
    y = jax.lax.conv_general_dilated(
        x_nhwc, w_hwio, window_strides=(1, 1), padding="SAME",
        dimension_numbers=("NHWC", "HWIO", "NHWC"))
    y = y + b
    mean = jnp.mean(y, axis=(0, 1, 2), keepdims=True)
    var = jnp.mean((y - mean) ** 2, axis=(0, 1, 2), keepdims=True)
    y = (y - mean) * jax.lax.rsqrt(var + EPS) * gamma + beta
    return jnp.maximum(y, 0.0)


def reference_forward(x_nchw, params):
    x = jnp.transpose(x_nchw, (0, 2, 3, 1))
    x = _ref_stage(x, params["w1"], params["b1"], params["g1"], params["beta1"])
    x = _ref_stage(x, params["w2"], params["b2"], params["g2"], params["beta2"])
    return jnp.transpose(x, (0, 3, 1, 2))


if __name__ == "__main__":
    # Shapes consistent with the module: batch=2, in_channels=4, out_channels=8,
    # spatial 16x16, kernel_size=3, batchnorm=True.
    N, Cin, H, W = 2, 4, 16, 16
    Cout, K = 8, 3

    key = jax.random.PRNGKey(0)
    k_x, k_w1, k_b1, k_w2, k_b2 = jax.random.split(key, 5)

    x = jax.random.normal(k_x, (N, Cin, H, W), jnp.float32)

    # Deterministic synthetic parameters (PyTorch shapes: OIHW weights, (Cout,) bias).
    w1_oihw = jax.random.normal(k_w1, (Cout, Cin, K, K), jnp.float32) * 0.1
    b1 = jax.random.normal(k_b1, (Cout,), jnp.float32) * 0.1
    w2_oihw = jax.random.normal(k_w2, (Cout, Cout, K, K), jnp.float32) * 0.1
    b2 = jax.random.normal(k_b2, (Cout,), jnp.float32) * 0.1

    params = dict(
        w1=jnp.transpose(w1_oihw, (2, 3, 1, 0)),  # OIHW -> HWIO
        b1=b1,
        g1=jnp.ones((Cout,), jnp.float32),        # BN default init
        beta1=jnp.zeros((Cout,), jnp.float32),
        w2=jnp.transpose(w2_oihw, (2, 3, 1, 0)),
        b2=b2,
        g2=jnp.ones((Cout,), jnp.float32),
        beta2=jnp.zeros((Cout,), jnp.float32),
    )

    out = jax.block_until_ready(conv2d_block_forward(x, params))
    ref = jax.block_until_ready(reference_forward(x, params))
    np.testing.assert_allclose(np.asarray(out), np.asarray(ref), rtol=1e-3, atol=1e-3)
    assert out.shape == (N, Cout, H, W)
    print("KERNEL_OK")
</pallas_src>

<mosaic_0001>
module attributes {stable_mosaic.version = 11 : i64} {
  func.func @_fused_block_kernel(%arg0: memref<32x64xf32, #tpu.memory_space<vmem>>, %arg1: memref<3x32x32xf32, #tpu.memory_space<vmem>>, %arg2: memref<3x64x128xf32, #tpu.memory_space<vmem>>, %arg3: memref<3x128x128xf32, #tpu.memory_space<vmem>>, %arg4: memref<128x128xf32, #tpu.memory_space<vmem>>, %arg5: memref<1x128xf32, #tpu.memory_space<vmem>>, %arg6: memref<1x128xf32, #tpu.memory_space<vmem>>, %arg7: memref<1x128xf32, #tpu.memory_space<vmem>>, %arg8: memref<1x128xf32, #tpu.memory_space<vmem>>, %arg9: memref<1x128xf32, #tpu.memory_space<vmem>>, %arg10: memref<1x128xf32, #tpu.memory_space<vmem>>, %arg11: memref<32x128xf32, #tpu.memory_space<vmem>>) attributes {dimension_semantics = [], scalar_prefetch = 0 : i64, scratch_operands = 0 : i64, tpu.core_type = #tpu.core_type<tc>} {
    %c0 = arith.constant 0 : index
    %c0_0 = arith.constant 0 : index
    %0 = vector.load %arg4[%c0, %c0_0] : memref<128x128xf32, #tpu.memory_space<vmem>>, vector<128x128xf32>
    %c0_1 = arith.constant 0 : index
    %c0_2 = arith.constant 0 : index
    %1 = vector.load %arg0[%c0_1, %c0_2] : memref<32x64xf32, #tpu.memory_space<vmem>>, vector<32x64xf32>
    %c0_3 = arith.constant 0 : index
    %c0_4 = arith.constant 0 : index
    %2 = vector.load %arg5[%c0_3, %c0_4] : memref<1x128xf32, #tpu.memory_space<vmem>>, vector<1x128xf32>
    %c0_5 = arith.constant 0 : index
    %c0_6 = arith.constant 0 : index
    %3 = vector.load %arg6[%c0_5, %c0_6] : memref<1x128xf32, #tpu.memory_space<vmem>>, vector<1x128xf32>
    %c0_7 = arith.constant 0 : index
    %c0_8 = arith.constant 0 : index
    %4 = vector.load %arg7[%c0_7, %c0_8] : memref<1x128xf32, #tpu.memory_space<vmem>>, vector<1x128xf32>
    %cst = arith.constant 0.000000e+00 : f32
    %5 = vector.broadcast %cst : f32 to vector<32x128xf32>
    %c0_9 = arith.constant 0 : index
    %c0_10 = arith.constant 0 : index
    %c0_11 = arith.constant 0 : index
    %6 = vector.load %arg1[%c0_9, %c0_10, %c0_11] : memref<3x32x32xf32, #tpu.memory_space<vmem>>, vector<1x32x32xf32>
    %7 = vector.shape_cast %6 : vector<1x32x32xf32> to vector<32x32xf32>
    %cst_12 = arith.constant dense<0.000000e+00> : vector<32x64xf32>
    %8 = tpu.matmul %7, %1, %cst_12 {dimension_numbers = #tpu.dot_dimension_numbers<[1], [0], [0], [1], [0, 0, 1, 1], [], []>} : vector<32x32xf32>, vector<32x64xf32>, vector<32x64xf32> -> vector<32x64xf32>
    %c0_13 = arith.constant 0 : index
    %c0_14 = arith.constant 0 : index
    %c0_15 = arith.constant 0 : index
    %9 = vector.load %arg2[%c0_13, %c0_14, %c0_15] : memref<3x64x128xf32, #tpu.memory_space<vmem>>, vector<1x64x128xf32>
    %10 = vector.shape_cast %9 : vector<1x64x128xf32> to vector<64x128xf32>
    %cst_16 = arith.constant dense<0.000000e+00> : vector<32x128xf32>
    %11 = tpu.matmul %8, %10, %cst_16 {dimension_numbers = #tpu.dot_dimension_numbers<[1], [0], [0], [1], [0, 0, 1, 1], [], []>} : vector<32x64xf32>, vector<64x128xf32>, vector<32x128xf32> -> vector<32x128xf32>
    %12 = arith.addf %5, %11 : vector<32x128xf32>
    %c1 = arith.constant 1 : index
    %c0_17 = arith.constant 0 : index
    %c0_18 = arith.constant 0 : index
    %13 = vector.load %arg1[%c1, %c0_17, %c0_18] : memref<3x32x32xf32, #tpu.memory_space<vmem>>, vector<1x32x32xf32>
    %14 = vector.shape_cast %13 : vector<1x32x32xf32> to vector<32x32xf32>
    %cst_19 = arith.constant dense<0.000000e+00> : vector<32x64xf32>
    %15 = tpu.matmul %14, %1, %cst_19 {dimension_numbers = #tpu.dot_dimension_numbers<[1], [0], [0], [1], [0, 0, 1, 1], [], []>} : vector<32x32xf32>, vector<32x64xf32>, vector<32x64xf32> -> vector<32x64xf32>
    %c1_20 = arith.constant 1 : index
    %c0_21 = arith.constant 0 : index
    %c0_22 = arith.constant 0 : index
    %16 = vector.load %arg2[%c1_20, %c0_21, %c0_22] : memref<3x64x128xf32, #tpu.memory_space<vmem>>, vector<1x64x128xf32>
    %17 = vector.shape_cast %16 : vector<1x64x128xf32> to vector<64x128xf32>
    %cst_23 = arith.constant dense<0.000000e+00> : vector<32x128xf32>
    %18 = tpu.matmul %15, %17, %cst_23 {dimension_numbers = #tpu.dot_dimension_numbers<[1], [0], [0], [1], [0, 0, 1, 1], [], []>} : vector<32x64xf32>, vector<64x128xf32>, vector<32x128xf32> -> vector<32x128xf32>
    %19 = arith.addf %12, %18 : vector<32x128xf32>
    %c2 = arith.constant 2 : index
    %c0_24 = arith.constant 0 : index
    %c0_25 = arith.constant 0 : index
    %20 = vector.load %arg1[%c2, %c0_24, %c0_25] : memref<3x32x32xf32, #tpu.memory_space<vmem>>, vector<1x32x32xf32>
    %21 = vector.shape_cast %20 : vector<1x32x32xf32> to vector<32x32xf32>
    %cst_26 = arith.constant dense<0.000000e+00> : vector<32x64xf32>
    %22 = tpu.matmul %21, %1, %cst_26 {dimension_numbers = #tpu.dot_dimension_numbers<[1], [0], [0], [1], [0, 0, 1, 1], [], []>} : vector<32x32xf32>, vector<32x64xf32>, vector<32x64xf32> -> vector<32x64xf32>
    %c2_27 = arith.constant 2 : index
    %c0_28 = arith.constant 0 : index
    %c0_29 = arith.constant 0 : index
    %23 = vector.load %arg2[%c2_27, %c0_28, %c0_29] : memref<3x64x128xf32, #tpu.memory_space<vmem>>, vector<1x64x128xf32>
    %24 = vector.shape_cast %23 : vector<1x64x128xf32> to vector<64x128xf32>
    %cst_30 = arith.constant dense<0.000000e+00> : vector<32x128xf32>
    %25 = tpu.matmul %22, %24, %cst_30 {dimension_numbers = #tpu.dot_dimension_numbers<[1], [0], [0], [1], [0, 0, 1, 1], [], []>} : vector<32x64xf32>, vector<64x128xf32>, vector<32x128xf32> -> vector<32x128xf32>
    %26 = arith.addf %19, %25 : vector<32x128xf32>
    %27 = vector.broadcast %2 : vector<1x128xf32> to vector<32x128xf32>
    %28 = arith.addf %26, %27 : vector<32x128xf32>
    %cst_31 = arith.constant dense<0.000000e+00> : vector<128xf32>
    %29 = vector.multi_reduction <add>, %28, %cst_31 [0] : vector<32x128xf32> to vector<128xf32>
    %30 = vector.shape_cast %29 : vector<128xf32> to vector<1x128xf32>
    %cst_32 = arith.constant dense<0.000000e+00> : vector<1x128xf32>
    %31 = tpu.matmul %30, %0, %cst_32 {dimension_numbers = #tpu.dot_dimension_numbers<[1], [0], [0], [1], [0, 0, 1, 1], [], []>} : vector<1x128xf32>, vector<128x128xf32>, vector<1x128xf32> -> vector<1x128xf32>
    %32 = vector.broadcast %31 : vector<1x128xf32> to vector<32x128xf32>
    %33 = arith.subf %28, %32 : vector<32x128xf32>
    %34 = arith.mulf %33, %33 : vector<32x128xf32>
    %cst_33 = arith.constant dense<0.000000e+00> : vector<128xf32>
    %35 = vector.multi_reduction <add>, %34, %cst_33 [0] : vector<32x128xf32> to vector<128xf32>
    %36 = vector.shape_cast %35 : vector<128xf32> to vector<1x128xf32>
    %cst_34 = arith.constant dense<0.000000e+00> : vector<1x128xf32>
    %37 = tpu.matmul %36, %0, %cst_34 {dimension_numbers = #tpu.dot_dimension_numbers<[1], [0], [0], [1], [0, 0, 1, 1], [], []>} : vector<1x128xf32>, vector<128x128xf32>, vector<1x128xf32> -> vector<1x128xf32>
    %cst_35 = arith.constant 9.99999974E-6 : f32
    %38 = vector.broadcast %cst_35 : f32 to vector<1x128xf32>
    %39 = arith.addf %37, %38 : vector<1x128xf32>
    %40 = math.rsqrt %39 : vector<1x128xf32>
    %41 = vector.broadcast %40 : vector<1x128xf32> to vector<32x128xf32>
    %42 = arith.mulf %33, %41 : vector<32x128xf32>
    %43 = vector.broadcast %3 : vector<1x128xf32> to vector<32x128xf32>
    %44 = arith.mulf %42, %43 : vector<32x128xf32>
    %45 = vector.broadcast %4 : vector<1x128xf32> to vector<32x128xf32>
    %46 = arith.addf %44, %45 : vector<32x128xf32>
    %cst_36 = arith.constant 0.000000e+00 : f32
    %47 = vector.broadcast %cst_36 : f32 to vector<32x128xf32>
    %48 = arith.maximumf %46, %47 : vector<32x128xf32>
    %c0_37 = arith.constant 0 : index
    %c0_38 = arith.constant 0 : index
    %49 = vector.load %arg8[%c0_37, %c0_38] : memref<1x128xf32, #tpu.memory_space<vmem>>, vector<1x128xf32>
    %c0_39 = arith.constant 0 : index
    %c0_40 = arith.constant 0 : index
    %50 = vector.load %arg9[%c0_39, %c0_40] : memref<1x128xf32, #tpu.memory_space<vmem>>, vector<1x128xf32>
    %c0_41 = arith.constant 0 : index
    %c0_42 = arith.constant 0 : index
    %51 = vector.load %arg10[%c0_41, %c0_42] : memref<1x128xf32, #tpu.memory_space<vmem>>, vector<1x128xf32>
    %cst_43 = arith.constant 0.000000e+00 : f32
    %52 = vector.broadcast %cst_43 : f32 to vector<32x128xf32>
    %c0_44 = arith.constant 0 : index
    %c0_45 = arith.constant 0 : index
    %c0_46 = arith.constant 0 : index
    %53 = vector.load %arg1[%c0_44, %c0_45, %c0_46] : memref<3x32x32xf32, #tpu.memory_space<vmem>>, vector<1x32x32xf32>
    %54 = vector.shape_cast %53 : vector<1x32x32xf32> to vector<32x32xf32>
    %cst_47 = arith.constant dense<0.000000e+00> : vector<32x128xf32>
    %55 = tpu.matmul %54, %48, %cst_47 {dimension_numbers = #tpu.dot_dimension_numbers<[1], [0], [0], [1], [0, 0, 1, 1], [], []>} : vector<32x32xf32>, vector<32x128xf32>, vector<32x128xf32> -> vector<32x128xf32>
    %c0_48 = arith.constant 0 : index
    %c0_49 = arith.constant 0 : index
    %c0_50 = arith.constant 0 : index
    %56 = vector.load %arg3[%c0_48, %c0_49, %c0_50] : memref<3x128x128xf32, #tpu.memory_space<vmem>>, vector<1x128x128xf32>
    %57 = vector.shape_cast %56 : vector<1x128x128xf32> to vector<128x128xf32>
    %cst_51 = arith.constant dense<0.000000e+00> : vector<32x128xf32>
    %58 = tpu.matmul %55, %57, %cst_51 {dimension_numbers = #tpu.dot_dimension_numbers<[1], [0], [0], [1], [0, 0, 1, 1], [], []>} : vector<32x128xf32>, vector<128x128xf32>, vector<32x128xf32> -> vector<32x128xf32>
    %59 = arith.addf %52, %58 : vector<32x128xf32>
    %c1_52 = arith.constant 1 : index
    %c0_53 = arith.constant 0 : index
    %c0_54 = arith.constant 0 : index
    %60 = vector.load %arg1[%c1_52, %c0_53, %c0_54] : memref<3x32x32xf32, #tpu.memory_space<vmem>>, vector<1x32x32xf32>
    %61 = vector.shape_cast %60 : vector<1x32x32xf32> to vector<32x32xf32>
    %cst_55 = arith.constant dense<0.000000e+00> : vector<32x128xf32>
    %62 = tpu.matmul %61, %48, %cst_55 {dimension_numbers = #tpu.dot_dimension_numbers<[1], [0], [0], [1], [0, 0, 1, 1], [], []>} : vector<32x32xf32>, vector<32x128xf32>, vector<32x128xf32> -> vector<32x128xf32>
    %c1_56 = arith.constant 1 : index
    %c0_57 = arith.constant 0 : index
    %c0_58 = arith.constant 0 : index
    %63 = vector.load %arg3[%c1_56, %c0_57, %c0_58] : memref<3x128x128xf32, #tpu.memory_space<vmem>>, vector<1x128x128xf32>
    %64 = vector.shape_cast %63 : vector<1x128x128xf32> to vector<128x128xf32>
    %cst_59 = arith.constant dense<0.000000e+00> : vector<32x128xf32>
    %65 = tpu.matmul %62, %64, %cst_59 {dimension_numbers = #tpu.dot_dimension_numbers<[1], [0], [0], [1], [0, 0, 1, 1], [], []>} : vector<32x128xf32>, vector<128x128xf32>, vector<32x128xf32> -> vector<32x128xf32>
    %66 = arith.addf %59, %65 : vector<32x128xf32>
    %c2_60 = arith.constant 2 : index
    %c0_61 = arith.constant 0 : index
    %c0_62 = arith.constant 0 : index
    %67 = vector.load %arg1[%c2_60, %c0_61, %c0_62] : memref<3x32x32xf32, #tpu.memory_space<vmem>>, vector<1x32x32xf32>
    %68 = vector.shape_cast %67 : vector<1x32x32xf32> to vector<32x32xf32>
    %cst_63 = arith.constant dense<0.000000e+00> : vector<32x128xf32>
    %69 = tpu.matmul %68, %48, %cst_63 {dimension_numbers = #tpu.dot_dimension_numbers<[1], [0], [0], [1], [0, 0, 1, 1], [], []>} : vector<32x32xf32>, vector<32x128xf32>, vector<32x128xf32> -> vector<32x128xf32>
    %c2_64 = arith.constant 2 : index
    %c0_65 = arith.constant 0 : index
    %c0_66 = arith.constant 0 : index
    %70 = vector.load %arg3[%c2_64, %c0_65, %c0_66] : memref<3x128x128xf32, #tpu.memory_space<vmem>>, vector<1x128x128xf32>
    %71 = vector.shape_cast %70 : vector<1x128x128xf32> to vector<128x128xf32>
    %cst_67 = arith.constant dense<0.000000e+00> : vector<32x128xf32>
    %72 = tpu.matmul %69, %71, %cst_67 {dimension_numbers = #tpu.dot_dimension_numbers<[1], [0], [0], [1], [0, 0, 1, 1], [], []>} : vector<32x128xf32>, vector<128x128xf32>, vector<32x128xf32> -> vector<32x128xf32>
    %73 = arith.addf %66, %72 : vector<32x128xf32>
    %74 = vector.broadcast %49 : vector<1x128xf32> to vector<32x128xf32>
    %75 = arith.addf %73, %74 : vector<32x128xf32>
    %cst_68 = arith.constant dense<0.000000e+00> : vector<128xf32>
    %76 = vector.multi_reduction <add>, %75, %cst_68 [0] : vector<32x128xf32> to vector<128xf32>
    %77 = vector.shape_cast %76 : vector<128xf32> to vector<1x128xf32>
    %cst_69 = arith.constant dense<0.000000e+00> : vector<1x128xf32>
    %78 = tpu.matmul %77, %0, %cst_69 {dimension_numbers = #tpu.dot_dimension_numbers<[1], [0], [0], [1], [0, 0, 1, 1], [], []>} : vector<1x128xf32>, vector<128x128xf32>, vector<1x128xf32> -> vector<1x128xf32>
    %79 = vector.broadcast %78 : vector<1x128xf32> to vector<32x128xf32>
    %80 = arith.subf %75, %79 : vector<32x128xf32>
    %81 = arith.mulf %80, %80 : vector<32x128xf32>
    %cst_70 = arith.constant dense<0.000000e+00> : vector<128xf32>
    %82 = vector.multi_reduction <add>, %81, %cst_70 [0] : vector<32x128xf32> to vector<128xf32>
    %83 = vector.shape_cast %82 : vector<128xf32> to vector<1x128xf32>
    %cst_71 = arith.constant dense<0.000000e+00> : vector<1x128xf32>
    %84 = tpu.matmul %83, %0, %cst_71 {dimension_numbers = #tpu.dot_dimension_numbers<[1], [0], [0], [1], [0, 0, 1, 1], [], []>} : vector<1x128xf32>, vector<128x128xf32>, vector<1x128xf32> -> vector<1x128xf32>
    %cst_72 = arith.constant 9.99999974E-6 : f32
    %85 = vector.broadcast %cst_72 : f32 to vector<1x128xf32>
    %86 = arith.addf %84, %85 : vector<1x128xf32>
    %87 = math.rsqrt %86 : vector<1x128xf32>
    %88 = vector.broadcast %87 : vector<1x128xf32> to vector<32x128xf32>
    %89 = arith.mulf %80, %88 : vector<32x128xf32>
    %90 = vector.broadcast %50 : vector<1x128xf32> to vector<32x128xf32>
    %91 = arith.mulf %89, %90 : vector<32x128xf32>
    %92 = vector.broadcast %51 : vector<1x128xf32> to vector<32x128xf32>
    %93 = arith.addf %91, %92 : vector<32x128xf32>
    %cst_73 = arith.constant 0.000000e+00 : f32
    %94 = vector.broadcast %cst_73 : f32 to vector<32x128xf32>
    %95 = arith.maximumf %93, %94 : vector<32x128xf32>
    %c0_74 = arith.constant 0 : index
    %c0_75 = arith.constant 0 : index
    %96 = vector.load %arg11[%c0_74, %c0_75] : memref<32x128xf32, #tpu.memory_space<vmem>>, vector<32x128xf32>
    tpu.vector_store %arg11[%c0_74, %c0_75], %95 {strides = array<i32>} : memref<32x128xf32, #tpu.memory_space<vmem>>, vector<32x128xf32>,
    return
  }
}

</mosaic_0001>

<bundles_post_ra>
// kernel: tpu_custom_call.1
= control target key start
LH: loop header
LB: loop body
LE: loop exit
PB: predicated region body
PF: predicated region fallthrough
CT: control target
= control target key end

     0   :  { %16 = vsyncpa [#allocation3], 0  ;;  %s1410_s0 = inlined_call_operand.hbm [shape: f32[32,64], index: 0, kind: input, shape index: {}]   ;;  %s1411_s1 = inlined_call_operand.hbm [shape: f32[3,32,32], index: 1, kind: input, shape index: {}]   ;;  %s1412_s2 = inlined_call_operand.hbm [shape: f32[3,64,128], index: 2, kind: input, shape index: {}]   ;;  %s1413_s3 = inlined_call_operand.hbm [shape: f32[3,128,128], index: 3, kind: input, shape index: {}]   ;;  %s1414_s4 = inlined_call_operand.hbm [shape: f32[128,128], index: 4, kind: input, shape index: {}]   ;;  %s1415_s5 = inlined_call_operand.vmem [shape: f32[1,128], index: 5, kind: input, shape index: {}]   ;;  %s1416_s6 = inlined_call_operand.vmem [shape: f32[1,128], index: 6, kind: input, shape index: {}]   ;;  %s1417_s7 = inlined_call_operand.vmem [shape: f32[1,128], index: 7, kind: input, shape index: {}]   ;;  %s1418_s8 = inlined_call_operand.vmem [shape: f32[1,128], index: 8, kind: input, shape index: {}]   ;;  %s1419_s9 = inlined_call_operand.vmem [shape: f32[1,128], index: 9, kind: input, shape index: {}]   ;;  %s1420_s10 = inlined_call_operand.vmem [shape: f32[1,128], index: 10, kind: input, shape index: {}]   ;;  %s1421_s11 = inlined_call_operand.hbm [shape: f32[32,128], index: 11, kind: output, shape index: {}]  }
   0x1   :  { %17 = vsyncpa [#allocation6], 0 }
   0x2   :  { %18 = vsyncpa [#allocation9], 0 }
   0x3   :  { %19 = vsyncpa [#allocation4], 0  ;;  %s37_s19 = sshll.u32 %s1411_s1, 4  ;;  %s1108_s20 = smov [#allocation5]   ;;  %s38_s19 = int_to_ptr.hbm [resolvable:$true] %s37_s19 }
   0x4   :  { %s39_s21 = sshll.u32 %s1108_s20, 4  ;;  %s63_s24 = sshll.u32 %s1413_s3, 4  ;;  %s40_s21 = int_to_ptr.vmem [resolvable:$true] %s39_s21  ;;  %s64_s24 = int_to_ptr.hbm [resolvable:$true] %s63_s24 }
   0x5   :  { %s1109_s25 = smov 128   ;;  %s1110_s26 = smov 8  }
   0x6   :  { %45 = dma.hbm_to_vmem [thread:$0]  %s38_s19, 1536, %s40_s21, [#allocation6], %s1109_s25, %s1109_s25, %s1110_s26  }
   0x7   :  { %s1111_s27 = smov [#allocation8]   ;;  %s24_s1 = sshll.u32 %s1410_s0, 4  ;;  %s25_s1 = int_to_ptr.hbm [resolvable:$true] %s24_s1 }
   0x8   :  { %s65_s28 = sshll.u32 %s1111_s27, 4  ;;  %s50_s13 = sshll.u32 %s1412_s2, 4  ;;  %s66_s28 = int_to_ptr.vmem [resolvable:$true] %s65_s28  ;;  %s51_s13 = int_to_ptr.hbm [resolvable:$true] %s50_s13 }
   0x9   :  { %71 = dma.hbm_to_vmem [thread:$0]  %s64_s24, 6144, %s66_s28, [#allocation9], %s1109_s25, %s1109_s25, %s1110_s26  }
   0xa   :  { %s1112_s14 = smov [#allocation2]   ;;  %s1113_s16 = smov [#allocation7]  }
   0xb   :  { %s26_s15 = sshll.u32 %s1112_s14, 4  ;;  %s52_s0 = sshll.u32 %s1113_s16, 4  ;;  %s27_s15 = int_to_ptr.vmem [resolvable:$true] %s26_s15  ;;  %s53_s0 = int_to_ptr.vmem [resolvable:$true] %s52_s0 }
   0xc   :  { %32 = dma.hbm_to_vmem [thread:$0]  %s25_s1, 512, %s27_s15, [#allocation3], %s1109_s25, %s1109_s25, %s1110_s26  }
   0xd   :  { %s76_s19 = sshll.u32 %s1414_s4, 4  ;;  %s1114_s2 = smov [#allocation10]   ;;  %s77_s19 = int_to_ptr.hbm [resolvable:$true] %s76_s19 }
   0xe   :  { %58 = dma.hbm_to_vmem [thread:$0]  %s51_s13, 3072, %s53_s0, [#allocation6], %s1109_s25, %s1109_s25, %s1110_s26  }
   0xf   :  { %s78_s20 = sshll.u32 %s1114_s2, 4  ;;  %s79_s20 = int_to_ptr.vmem [resolvable:$true] %s78_s20 }
  0x10   :  { %84 = dma.hbm_to_vmem [thread:$0]  %s77_s19, 2048, %s79_s20, [#allocation9], %s1109_s25, %s1109_s25, %s1110_s26  }
  0x11   :  { %1100 = dma.done.wait [#allocation3], 512  }
  0x12   :  { %1101 = vsyncadd [#allocation3], 4294966784 }
  0x13   :  { %1102 = dma.done.wait [#allocation6], 4608  }
  0x14   :  { %1103 = vsyncadd [#allocation6], 4294962688 }
  0x15   :  { %1104 = dma.done.wait [#allocation9], 8192  }
  0x16   :  { %1105 = vsyncadd [#allocation9], 4294959104  ;;  %v136_v0 = vld [vmem:[#allocation2 + $0x18] sm:$0xff]  ;;  %v135_v1 = vld [vmem:[#allocation2 + $0x10] sm:$0xff]  ;;  %vm144_vm0 = vcmask 261120   ;;  %vm249_vm1 = vcmask 523264  }
  0x17   :  { %169 = vmatpush.msra.mxu0 %v136_v0  ;;  %223 = vmatpush.msra.mxu1 %v136_v0  ;;  %v134_v2 = vld [vmem:[#allocation2 + $0x8] sm:$0xff]  ;;  %v133_v3 = vld [vmem:[#allocation2] sm:$0xff]  ;;  %v1222_v8 = vld [vmem:[#allocation5 + $0x10] sm:$0xff]  ;;  %s887_s12 = sshll.u32 %s1421_s11, 4  ;;  %s888_s12 = int_to_ptr.hbm [resolvable:$true] %s887_s12 }
  0x18   :  { %v1206_v4 = vld [vmem:[#allocation5] sm:$0xff]  ;;  %v1214_v6 = vld [vmem:[#allocation5 + $0x8] sm:$0xff]  ;;  %v1224_v9 = vld [vmem:[#allocation5 + $0x30] sm:$0xff] }
  0x19   :  { %170 = vmatpush.msra.mxu0 %v135_v1  ;;  %224 = vmatpush.msra.mxu1 %v135_v1  ;;  %v1208_v5 = vld [vmem:[#allocation5 + $0x20] sm:$0xff]  ;;  %v1216_v7 = vld [vmem:[#allocation5 + $0x28] sm:$0xff]  ;;  %v1230_v10 = vld [vmem:[#allocation5 + $0x18] sm:$0xff] }
  0x1a   :  { %v1232_v11 = vld [vmem:[#allocation5 + $0x38] sm:$0xff]  ;;  %v247_v14 = vld [vmem:[#allocation7 + $0x70] sm:$0xff]  ;;  %v246_v16 = vld [vmem:[#allocation7 + $0x68] sm:$0xff] }
  0x1b   :  { %171 = vmatpush.msra.mxu0 %v134_v2  ;;  %225 = vmatpush.msra.mxu1 %v134_v2  ;;  %v248_v12 = vld [vmem:[#allocation7 + $0x78] sm:$0xff]  ;;  %v192_v15 = vld [vmem:[#allocation7 + $0x30] sm:$0xff]  ;;  %v191_v17 = vld [vmem:[#allocation7 + $0x28] sm:$0xff] }
  0x1c   :  { %v193_v13 = vld [vmem:[#allocation7 + $0x38] sm:$0xff]  ;;  %270 = vmatpush.msra.mxu2 %v248_v12  ;;  %v245_v18 = vld [vmem:[#allocation7 + $0x60] sm:$0xff]  ;;  %v243_v23 = vld [vmem:[#allocation7 + $0x50] sm:$0xff] }
  0x1d   :  { %172 = vmatpush.msra.mxu0 %v133_v3  ;;  %226 = vmatpush.msra.mxu1 %v133_v3  ;;  %v190_v19 = vld [vmem:[#allocation7 + $0x20] sm:$0xff]  ;;  %v244_v21 = vld [vmem:[#allocation7 + $0x58] sm:$0xff]  ;;  %v188_v24 = vld [vmem:[#allocation7 + $0x10] sm:$0xff] }
  0x1e   :  { %902 = vmatmul.msk.f32.vlgmr.msra.gmra.mxu0 %vm144_vm0, %v1206_v4  ;;  %906 = vmatmul.msk.f32.vlgmr.msra.gmra.mxu1 %vm144_vm0, %v1208_v5  ;;  %v1238_v20 = vld [vmem:[#allocation5 + $0x40] sm:$0xff]  ;;  %v189_v22 = vld [vmem:[#allocation7 + $0x18] sm:$0xff]  ;;  %v242_v25 = vld [vmem:[#allocation7 + $0x48] sm:$0xff] }
  0x1f   :  { %361 = vmatpush.msrb.mxu0 %v136_v0  ;;  %311 = vmatpush.msra.mxu3 %v193_v13  ;;  %v187_v26 = vld [vmem:[#allocation7 + $0x8] sm:$0xff]  ;;  %v1246_v28 = vld [vmem:[#allocation5 + $0x50] sm:$0xff]  ;;  %v1250_v29 = vld [vmem:[#allocation5 + $0x58] sm:$0xff] }
  0x20   :  { %271 = vmatpush.msra.mxu2 %v247_v14  ;;  %v1242_v27 = vld [vmem:[#allocation5 + $0x48] sm:$0xff]  ;;  %v241_v30 = vld [vmem:[#allocation7 + $0x40] sm:$0xff]  ;;  %v386_v32 = vld [vmem:[#allocation7 + $0xb8] sm:$0xff] }
  0x21   :  { %362 = vmatpush.msrb.mxu0 %v135_v1  ;;  %312 = vmatpush.msra.mxu3 %v192_v15  ;;  %v186_v31 = vld [vmem:[#allocation7] sm:$0xff]  ;;  %v385_v33 = vld [vmem:[#allocation7 + $0xb0] sm:$0xff]  ;;  %v384_v34 = vld [vmem:[#allocation7 + $0xa8] sm:$0xff] }
  0x22   :  { %272 = vmatpush.msra.mxu2 %v246_v16  ;;  %407 = vmatpush.msrb.mxu1 %v386_v32  ;;  %v383_v35 = vld [vmem:[#allocation7 + $0xa0] sm:$0xff]  ;;  %v382_v36 = vld [vmem:[#allocation7 + $0x98] sm:$0xff]  ;;  %v381_v37 = vld [vmem:[#allocation7 + $0x90] sm:$0xff] }
  0x23   :  { %363 = vmatpush.msrb.mxu0 %v134_v2  ;;  %313 = vmatpush.msra.mxu3 %v191_v17  ;;  %v380_v38 = vld [vmem:[#allocation7 + $0x88] sm:$0xff]  ;;  %v379_v39 = vld [vmem:[#allocation7 + $0x80] sm:$0xff]  ;;  %v1266_v52 = vld [vmem:[#allocation10 + $0x78] sm:$0xff] }
  0x24   :  { %273 = vmatpush.msra.mxu2 %v245_v18  ;;  %408 = vmatpush.msrb.mxu1 %v385_v33  ;;  %v1270_v53 = vld [vmem:[#allocation10 + $0x70] sm:$0xff]  ;;  %v1274_v54 = vld [vmem:[#allocation10 + $0x68] sm:$0xff]  ;;  %v1278_v55 = vld [vmem:[#allocation10 + $0x60] sm:$0xff] }
  0x25   :  { %364 = vmatpush.msrb.mxu0 %v133_v3  ;;  %314 = vmatpush.msra.mxu3 %v190_v19  ;;  %v1282_v56 = vld [vmem:[#allocation10 + $0x58] sm:$0xff]  ;;  %v1286_v58 = vld [vmem:[#allocation10 + $0x50] sm:$0xff]  ;;  %v1290_v60 = vld [vmem:[#allocation10 + $0x48] sm:$0xff] }
  0x26   :  { %903 = vmatmul.msk.f32.gmra.mxu0 %vm144_vm0, %v1214_v6  ;;  %907 = vmatmul.msk.f32.gmra.mxu1 %vm144_vm0, %v1216_v7  ;;  %v1294_v61 = vld [vmem:[#allocation10 + $0x40] sm:$0xff]  ;;  %v1298_v62 = vld [vmem:[#allocation10 + $0x38] sm:$0xff]  ;;  %v1302_v63 = vld [vmem:[#allocation10 + $0x30] sm:$0xff] }
  0x27   :  { %274 = vmatpush.msra.mxu2 %v244_v21  ;;  %315 = vmatpush.msra.mxu3 %v189_v22  ;;  %v1306_v1 = vld [vmem:[#allocation10 + $0x28] sm:$0xff]  ;;  %v1310_v12 = vld [vmem:[#allocation10 + $0x20] sm:$0xff]  ;;  %v1312_v13 = vld [vmem:[#allocation10 + $0x18] sm:$0xff] }
  0x28   :  { %409 = vmatpush.msrb.mxu1 %v384_v34  ;;  %v1316_v14 = vld [vmem:[#allocation10 + $0x10] sm:$0xff]  ;;  %v1320_v15 = vld [vmem:[#allocation10 + $0x8] sm:$0xff]  ;;  %v1324_v16 = vld [vmem:[#allocation10] sm:$0xff] }
  0x29   :  { %275 = vmatpush.msra.mxu2 %v243_v23  ;;  %316 = vmatpush.msra.mxu3 %v188_v24 }
  0x2a   :  { %410 = vmatpush.msrb.mxu1 %v383_v35 }
  0x2b   :  { %276 = vmatpush.msra.mxu2 %v242_v25  ;;  %317 = vmatpush.msra.mxu3 %v187_v26 }
  0x2c   :  { %411 = vmatpush.msrb.mxu1 %v382_v36 }
  0x2d   :  { %277 = vmatpush.msra.mxu2 %v241_v30  ;;  %318 = vmatpush.msra.mxu3 %v186_v31  ;;  %v946_v30 = vld [vmem:[%s1415_s5] ss:$0 sm:$0xff] }
  0x2e   :  { %904 = vmatmul.msk.f32.gmra.mxu0 %vm144_vm0, %v1222_v8  ;;  %908 = vmatmul.msk.f32.gmra.mxu1 %vm144_vm0, %v1224_v9 }
  0x2f   :  { %412 = vmatpush.msrb.mxu1 %v381_v37  ;;  %448 = vmatpush.msrb.mxu2 %v1266_v52 }
  0x30   :  { %486 = vmatpush.msrb.mxu3 %v1266_v52 }
  0x31   :  { %413 = vmatpush.msrb.mxu1 %v380_v38  ;;  %449 = vmatpush.msrb.mxu2 %v1270_v53 }
  0x32   :  { %487 = vmatpush.msrb.mxu3 %v1270_v53 }
  0x33   :  { %414 = vmatpush.msrb.mxu1 %v379_v39  ;;  %450 = vmatpush.msrb.mxu2 %v1274_v54 }
  0x34   :  { %488 = vmatpush.msrb.mxu3 %v1274_v54 }
  0x35   :  { %451 = vmatpush.msrb.mxu2 %v1278_v55 }
  0x36   :  { %905 = vmatmul.msk.f32.gmra.mxu0 %vm144_vm0, %v1230_v10  ;;  %909 = vmatmul.msk.f32.gmra.mxu1 %vm144_vm0, %v1232_v11 }
  0x37   :  { %489 = vmatpush.msrb.mxu3 %v1278_v55  ;;  %452 = vmatpush.msrb.mxu2 %v1282_v56 }
  0x39   :  { %490 = vmatpush.msrb.mxu3 %v1282_v56  ;;  %453 = vmatpush.msrb.mxu2 %v1286_v58 }
  0x3b   :  { %491 = vmatpush.msrb.mxu3 %v1286_v58  ;;  %454 = vmatpush.msrb.mxu2 %v1290_v60 }
  0x3d   :  { %492 = vmatpush.msrb.mxu3 %v1290_v60  ;;  %455 = vmatpush.msrb.mxu2 %v1294_v61 }
  0x3e   :  { %918 = vmatmul.msk.f32.vlgmr.msrb.gmra.mxu0 %vm144_vm0, %v1238_v20 }
  0x3f   :  { %493 = vmatpush.msrb.mxu3 %v1294_v61  ;;  %456 = vmatpush.msrb.mxu2 %v1298_v62 }
  0x41   :  { %494 = vmatpush.msrb.mxu3 %v1298_v62  ;;  %457 = vmatpush.msrb.mxu2 %v1302_v63 }
  0x43   :  { %495 = vmatpush.msrb.mxu3 %v1302_v63  ;;  %458 = vmatpush.msrb.mxu2 %v1306_v1 }
  0x45   :  { %496 = vmatpush.msrb.mxu3 %v1306_v1  ;;  %459 = vmatpush.msrb.mxu2 %v1310_v12 }
  0x46   :  { %919 = vmatmul.msk.f32.gmra.mxu0 %vm144_vm0, %v1242_v27 }
  0x47   :  { %497 = vmatpush.msrb.mxu3 %v1310_v12  ;;  %460 = vmatpush.msrb.mxu2 %v1312_v13 }
  0x49   :  { %498 = vmatpush.msrb.mxu3 %v1312_v13  ;;  %461 = vmatpush.msrb.mxu2 %v1316_v14 }
  0x4b   :  { %499 = vmatpush.msrb.mxu3 %v1316_v14  ;;  %462 = vmatpush.msrb.mxu2 %v1320_v15 }
  0x4d   :  { %500 = vmatpush.msrb.mxu3 %v1320_v15  ;;  %463 = vmatpush.msrb.mxu2 %v1324_v16 }
  0x4e   :  { %920 = vmatmul.msk.f32.gmra.mxu0 %vm144_vm0, %v1246_v28 }
  0x4f   :  { %501 = vmatpush.msrb.mxu3 %v1324_v16 }
  0x56   :  { %921 = vmatmul.msk.f32.gmra.mxu0 %vm144_vm0, %v1250_v29 }
  0x9b   :  { %v174_v40 = vpop.f32.mrf.mxu0  ;;  %v228_v41 = vpop.f32.mrf.mxu1 }
  0x9c   :  { %910 = vmatmul.msk.f32.vlgmr.msra.gmra.mxu2 %vm249_vm1, %v228_v41  ;;  %914 = vmatmul.msk.f32.vlgmr.msra.gmra.mxu3 %vm249_vm1, %v174_v40 }
  0xa3   :  { %v177_v42 = vpop.f32.mrf.mxu0  ;;  %v231_v43 = vpop.f32.mrf.mxu1 }
  0xa4   :  { %911 = vmatmul.msk.f32.gmra.mxu2 %vm249_vm1, %v231_v43  ;;  %915 = vmatmul.msk.f32.gmra.mxu3 %vm249_vm1, %v177_v42 }
  0xab   :  { %v180_v44 = vpop.f32.mrf.mxu0  ;;  %v234_v45 = vpop.f32.mrf.mxu1 }
  0xac   :  { %912 = vmatmul.msk.f32.gmra.mxu2 %vm249_vm1, %v234_v45  ;;  %916 = vmatmul.msk.f32.gmra.mxu3 %vm249_vm1, %v180_v44 }
  0xb3   :  { %v183_v46 = vpop.f32.mrf.mxu0  ;;  %v237_v47 = vpop.f32.mrf.mxu1 }
  0xb4   :  { %913 = vmatmul.msk.f32.gmra.mxu2 %vm249_vm1, %v237_v47  ;;  %917 = vmatmul.msk.f32.gmra.mxu3 %vm249_vm1, %v183_v46 }
  0xbb   :  { %v366_v48 = vpop.f32.mrf.mxu0 }
  0xbc   :  { %922 = vmatmul.msk.f32.vlgmr.msrb.gmra.mxu1 %vm249_vm1, %v366_v48 }
  0xc3   :  { %v369_v49 = vpop.f32.mrf.mxu0 }
  0xc4   :  { %923 = vmatmul.msk.f32.gmra.mxu1 %vm249_vm1, %v369_v49 }
  0xcb   :  { %v372_v50 = vpop.f32.mrf.mxu0 }
  0xcc   :  { %924 = vmatmul.msk.f32.gmra.mxu1 %vm249_vm1, %v372_v50 }
  0xd3   :  { %v375_v51 = vpop.f32.mrf.mxu0 }
  0xd4   :  { %925 = vmatmul.msk.f32.gmra.mxu1 %vm249_vm1, %v375_v51 }
 0x11f   :  { %v279_v57 = vpop.f32.mrf.mxu2  ;;  %v320_v59 = vpop.f32.mrf.mxu3 }
 0x120   :  { %v321_v23 = vadd.f32 %v320_v59, %v279_v57 }
 0x127   :  { %v282_v0 = vpop.f32.mrf.mxu2  ;;  %v323_v2 = vpop.f32.mrf.mxu3 }
 0x128   :  { %v324_v21 = vadd.f32 %v323_v2, %v282_v0 }
 0x12f   :  { %v285_v18 = vpop.f32.mrf.mxu2  ;;  %v326_v19 = vpop.f32.mrf.mxu3 }
 0x130   :  { %v327_v24 = vadd.f32 %v326_v19, %v285_v18 }
 0x137   :  { %v288_v32 = vpop.f32.mrf.mxu2  ;;  %v329_v33 = vpop.f32.mrf.mxu3 }
 0x138   :  { %v330_v35 = vadd.f32 %v329_v33, %v288_v32 }
 0x139   :  { %v416_v3 = vpop.f32.mrf.mxu1 }
 0x13a   :  { %v428_v26 = vadd.f32 %v416_v3, %v321_v23 }
 0x13c   :  { %v435_v36 = vadd.f32 %v946_v30, %v428_v26 }
 0x141   :  { %v419_v17 = vpop.f32.mrf.mxu1 }
 0x142   :  { %v429_v25 = vadd.f32 %v419_v17, %v324_v21 }
 0x144   :  { %v436_v34 = vadd.f32 %v946_v30, %v429_v25 }
 0x146   :  { %v439_v39 = vadd.f32 %v436_v34, %v435_v36 }
 0x149   :  { %v422_v22 = vpop.f32.mrf.mxu1 }
 0x14a   :  { %v430_v31 = vadd.f32 %v422_v22, %v327_v24 }
 0x14c   :  { %v437_v37 = vadd.f32 %v946_v30, %v430_v31 }
 0x14e   :  { %v440_v41 = vadd.f32 %v439_v39, %v437_v37 }
 0x151   :  { %v425_v38 = vpop.f32.mrf.mxu1 }
 0x152   :  { %v431_v40 = vadd.f32 %v425_v38, %v330_v35 }
 0x154   :  { %v438_v42 = vadd.f32 %v946_v30, %v431_v40 }
 0x156   :  { %v441_v43 = vadd.f32 %v440_v41, %v438_v42 }
 0x158   :  { %v442_v44 = vrot.slane %v441_v43, 4 }
 0x15a   :  { %v443_v45 = vadd.f32 %v442_v44, %v441_v43  ;;  %v947_v43 = vld [vmem:[%s1416_s6] ss:$0 sm:$0xff] }
 0x15c   :  { %v444_v46 = vrot.slane %v443_v45, 2 }
 0x15e   :  { %v445_v47 = vadd.f32 %v444_v46, %v443_v45  ;;  %v948_v45 = vld [vmem:[%s1417_s7] ss:$0 sm:$0xff] }
 0x160   :  { %v446_v48 = vrot.slane %v445_v47, 1 }
 0x162   :  { %v447_v49 = vadd.f32 %v446_v48, %v445_v47 }
 0x164   :  { %464 = vmatmul.f32.vlgmr.msrb.gmra.mxu2 %v447_v49 }
 0x1e7   :  { %v465_v50 = vpop.f32.mrf.mxu2 }
 0x1e8   :  { %v468_v51 = vperm.slane %v465_v50, 0 }
 0x1ea   :  { %v469_v57 = vsub.f32 %v435_v36, %v468_v51  ;;  %v470_v59 = vsub.f32 %v436_v34, %v468_v51  ;;  %v471_v0 = vsub.f32 %v437_v37, %v468_v51  ;;  %v472_v2 = vsub.f32 %v438_v42, %v468_v51 }
 0x1ec   :  { %v473_v3 = vmul.f32 %v469_v57, %v469_v57  ;;  %v474_v17 = vmul.f32 %v470_v59, %v470_v59  ;;  %v475_v18 = vmul.f32 %v471_v0, %v471_v0  ;;  %v476_v21 = vmul.f32 %v472_v2, %v472_v2 }
 0x1ee   :  { %v477_v19 = vadd.f32 %v474_v17, %v473_v3 }
 0x1f0   :  { %v478_v22 = vadd.f32 %v477_v19, %v475_v18 }
 0x1f2   :  { %v479_v23 = vadd.f32 %v478_v22, %v476_v21 }
 0x1f4   :  { %v480_v24 = vrot.slane %v479_v23, 4 }
 0x1f6   :  { %v481_v25 = vadd.f32 %v480_v24, %v479_v23  ;;  %v583_v24 = vld [vmem:[#allocation8 + $0x60] sm:$0xff] }
 0x1f8   :  { %v482_v26 = vrot.slane %v481_v25, 2 }
 0x1fa   :  { %v483_v30 = vadd.f32 %v482_v26, %v481_v25  ;;  %v582_v25 = vld [vmem:[#allocation8 + $0x58] sm:$0xff]  ;;  %v626_v26 = vld [vmem:[#allocation8 + $0xc8] sm:$0xff] }
 0x1fc   :  { %v484_v31 = vrot.slane %v483_v30, 1 }
 0x1fe   :  { %v485_v32 = vadd.f32 %v484_v31, %v483_v30  ;;  %v580_v30 = vld [vmem:[#allocation8 + $0x48] sm:$0xff]  ;;  %v625_v31 = vld [vmem:[#allocation8 + $0xc0] sm:$0xff] }
 0x200   :  { %502 = vmatmul.f32.vlgmr.msrb.gmra.mxu3 %v485_v32  ;;  %v579_v32 = vld [vmem:[#allocation8 + $0x40] sm:$0xff] }
 0x283   :  { %v503_v33 = vpop.f32.mrf.mxu3 }
 0x284   :  { %v504_v35 = vadd.f32 1e-05, %v503_v33  ;;  %v624_v33 = vld [vmem:[#allocation8 + $0xb8] sm:$0xff] }
 0x286   :  { %952 = vrsqrt.f32 %v504_v35  ;;  %vm512_vm3 = vweird.f32 %v504_v35 }
 0x28c   :  { %v953_v34 = vpop.eup %952 }
 0x28d   :  { %v507_v36 = vmul.f32 %v953_v34, %v504_v35  ;;  %vm513_vm2 = vweird.f32 %v953_v34  ;;  %v578_v35 = vld [vmem:[#allocation8 + $0x38] sm:$0xff] }
 0x28e   :  { %vm514_vm4 = vmor %vm512_vm3, %vm513_vm2 }
 0x28f   :  { %v508_v37 = vmul.f32 %v953_v34, %v507_v36  ;;  %v622_v36 = vld [vmem:[#allocation8 + $0xa8] sm:$0xff] }
 0x291   :  { %v509_v38 = vmul.f32 0.5, %v508_v37  ;;  %v576_v37 = vld [vmem:[#allocation8 + $0x28] sm:$0xff] }
 0x293   :  { %v510_v39 = vsub.f32 1.5, %v509_v38  ;;  %v621_v38 = vld [vmem:[#allocation8 + $0xa0] sm:$0xff] }
 0x295   :  { %v511_v40 = vmul.f32 %v953_v34, %v510_v39  ;;  %v575_v39 = vld [vmem:[#allocation8 + $0x20] sm:$0xff] }
 0x297   :  { %v515_v41 = vsel %vm514_vm4, %v953_v34, %v511_v40  ;;  %v577_v34 = vld [vmem:[#allocation8 + $0x30] sm:$0xff]  ;;  %v620_v40 = vld [vmem:[#allocation8 + $0x98] sm:$0xff] }
 0x298   :  { %v516_v42 = vperm.slane %v515_v41, 0  ;;  %v574_v41 = vld [vmem:[#allocation8 + $0x18] sm:$0xff] }
 0x29a   :  { %v520_v44 = vmul.f32 %v516_v42, %v472_v2  ;;  %v519_v46 = vmul.f32 %v516_v42, %v471_v0  ;;  %v518_v47 = vmul.f32 %v516_v42, %v470_v59  ;;  %v517_v48 = vmul.f32 %v516_v42, %v469_v57  ;;  %v631_v57 = vld [vmem:[#allocation8 + $0xf0] sm:$0xff]  ;;  %v630_v59 = vld [vmem:[#allocation8 + $0xe8] sm:$0xff] }
 0x29b   :  { %v573_v42 = vld [vmem:[#allocation8 + $0x10] sm:$0xff] }
 0x29c   :  { %v527_v49 = vmul.f32 %v947_v43, %v520_v44  ;;  %v526_v50 = vmul.f32 %v947_v43, %v519_v46  ;;  %v525_v51 = vmul.f32 %v947_v43, %v518_v47  ;;  %v524_v18 = vmul.f32 %v947_v43, %v517_v48  ;;  %v618_v43 = vld [vmem:[#allocation8 + $0x88] sm:$0xff]  ;;  %v571_v46 = vld [vmem:[#allocation8] sm:$0xff]  ;;  %v736_v47 = vld [vmem:[#allocation8 + $0x178] sm:$0xff] }
 0x29d   :  { %v572_v44 = vld [vmem:[#allocation8 + $0x8] sm:$0xff]  ;;  %v735_v48 = vld [vmem:[#allocation8 + $0x170] sm:$0xff] }
 0x29e   :  { %v534_v3 = vadd.f32 %v948_v45, %v527_v49  ;;  %v533_v17 = vadd.f32 %v948_v45, %v526_v50  ;;  %v532_v21 = vadd.f32 %v948_v45, %v525_v51  ;;  %v531_v23 = vadd.f32 %v948_v45, %v524_v18  ;;  %v617_v45 = vld [vmem:[#allocation8 + $0x80] sm:$0xff]  ;;  %v732_v49 = vld [vmem:[#allocation8 + $0x158] sm:$0xff]  ;;  %v731_v50 = vld [vmem:[#allocation8 + $0x150] sm:$0xff] }
 0x2a0   :  { %v538_v19 = vmax.f32 %v534_v3, 0.0  ;;  %v537_v22 = vmax.f32 %v533_v17, 0.0  ;;  %v536_v2 = vmax.f32 %v532_v21, 0.0  ;;  %v535_v0 = vmax.f32 %v531_v23, 0.0 }
 0x2a2   :  { %554 = vmatpush.msra.mxu2 %v538_v19  ;;  %599 = vmatpush.msra.mxu3 %v538_v19 }
 0x2a4   :  { %555 = vmatpush.msra.mxu2 %v537_v22  ;;  %600 = vmatpush.msra.mxu3 %v537_v22 }
 0x2a6   :  { %556 = vmatpush.msra.mxu2 %v536_v2  ;;  %601 = vmatpush.msra.mxu3 %v536_v2 }
 0x2a8   :  { %557 = vmatpush.msra.mxu2 %v535_v0  ;;  %602 = vmatpush.msra.mxu3 %v535_v0 }
 0x2a9   :  { %926 = vmatmul.msk.f32.vlgmr.msra.gmra.mxu2 %vm144_vm0, %v1206_v4  ;;  %930 = vmatmul.msk.f32.vlgmr.msra.gmra.mxu3 %vm144_vm0, %v1208_v5  ;;  %v632_v4 = vld [vmem:[#allocation8 + $0xf8] sm:$0xff] }
 0x2aa   :  { %703 = vmatpush.msrb.mxu2 %v538_v19  ;;  %v586_v5 = vld [vmem:[#allocation8 + $0x78] sm:$0xff]  ;;  %633 = vmatpush.msra.mxu0 %v632_v4 }
 0x2ab   :  { %662 = vmatpush.msra.mxu1 %v586_v5  ;;  %737 = vmatpush.msrb.mxu3 %v736_v47 }
 0x2ac   :  { %704 = vmatpush.msrb.mxu2 %v537_v22  ;;  %634 = vmatpush.msra.mxu0 %v631_v57 }
 0x2ad   :  { %738 = vmatpush.msrb.mxu3 %v735_v48 }
 0x2ae   :  { %705 = vmatpush.msrb.mxu2 %v536_v2  ;;  %635 = vmatpush.msra.mxu0 %v630_v59 }
 0x2b0   :  { %706 = vmatpush.msrb.mxu2 %v535_v0 }
 0x2b1   :  { %927 = vmatmul.msk.f32.gmra.mxu2 %vm144_vm0, %v1214_v6  ;;  %931 = vmatmul.msk.f32.gmra.mxu3 %vm144_vm0, %v1216_v7  ;;  %v585_v6 = vld [vmem:[#allocation8 + $0x70] sm:$0xff]  ;;  %v584_v7 = vld [vmem:[#allocation8 + $0x68] sm:$0xff] }
 0x2b2   :  { %663 = vmatpush.msra.mxu1 %v585_v6 }
 0x2b4   :  { %664 = vmatpush.msra.mxu1 %v584_v7 }
 0x2b6   :  { %665 = vmatpush.msra.mxu1 %v583_v24 }
 0x2b8   :  { %666 = vmatpush.msra.mxu1 %v582_v25 }
 0x2b9   :  { %928 = vmatmul.msk.f32.gmra.mxu2 %vm144_vm0, %v1222_v8  ;;  %932 = vmatmul.msk.f32.gmra.mxu3 %vm144_vm0, %v1224_v9  ;;  %v629_v8 = vld [vmem:[#allocation8 + $0xe0] sm:$0xff]  ;;  %v628_v9 = vld [vmem:[#allocation8 + $0xd8] sm:$0xff] }
 0x2ba   :  { %636 = vmatpush.msra.mxu0 %v629_v8 }
 0x2bc   :  { %637 = vmatpush.msra.mxu0 %v628_v9 }
 0x2c1   :  { %929 = vmatmul.msk.f32.gmra.mxu2 %vm144_vm0, %v1230_v10  ;;  %933 = vmatmul.msk.f32.gmra.mxu3 %vm144_vm0, %v1232_v11  ;;  %v627_v10 = vld [vmem:[#allocation8 + $0xd0] sm:$0xff] }
 0x2c2   :  { %v581_v11 = vld [vmem:[#allocation8 + $0x50] sm:$0xff]  ;;  %638 = vmatpush.msra.mxu0 %v627_v10  ;;  %v949_v10 = vld [vmem:[%s1418_s8] ss:$0 sm:$0xff] }
 0x2c3   :  { %667 = vmatpush.msra.mxu1 %v581_v11 }
 0x2c4   :  { %639 = vmatpush.msra.mxu0 %v626_v26 }
 0x2c5   :  { %668 = vmatpush.msra.mxu1 %v580_v30 }
 0x2c6   :  { %640 = vmatpush.msra.mxu0 %v625_v31 }
 0x2c7   :  { %669 = vmatpush.msra.mxu1 %v579_v32 }
 0x2c8   :  { %641 = vmatpush.msra.mxu0 %v624_v33 }
 0x2c9   :  { %934 = vmatmul.msk.f32.vlgmr.msrb.gmra.mxu2 %vm144_vm0, %v1238_v20  ;;  %v623_v20 = vld [vmem:[#allocation8 + $0xb0] sm:$0xff]  ;;  %670 = vmatpush.msra.mxu1 %v578_v35 }
 0x2ca   :  { %642 = vmatpush.msra.mxu0 %v623_v20 }
 0x2cb   :  { %671 = vmatpush.msra.mxu1 %v577_v34 }
 0x2cc   :  { %643 = vmatpush.msra.mxu0 %v622_v36 }
 0x2cd   :  { %672 = vmatpush.msra.mxu1 %v576_v37 }
 0x2ce   :  { %644 = vmatpush.msra.mxu0 %v621_v38 }
 0x2cf   :  { %673 = vmatpush.msra.mxu1 %v575_v39 }
 0x2d0   :  { %645 = vmatpush.msra.mxu0 %v620_v40 }
 0x2d1   :  { %935 = vmatmul.msk.f32.gmra.mxu2 %vm144_vm0, %v1242_v27  ;;  %v619_v27 = vld [vmem:[#allocation8 + $0x90] sm:$0xff]  ;;  %674 = vmatpush.msra.mxu1 %v574_v41 }
 0x2d2   :  { %646 = vmatpush.msra.mxu0 %v619_v27 }
 0x2d3   :  { %675 = vmatpush.msra.mxu1 %v573_v42 }
 0x2d4   :  { %647 = vmatpush.msra.mxu0 %v618_v43 }
 0x2d5   :  { %676 = vmatpush.msra.mxu1 %v572_v44 }
 0x2d6   :  { %648 = vmatpush.msra.mxu0 %v617_v45 }
 0x2d7   :  { %677 = vmatpush.msra.mxu1 %v571_v46 }
 0x2d8   :  { %786 = vmatpush.msrb.mxu0 %v1266_v52 }
 0x2d9   :  { %936 = vmatmul.msk.f32.gmra.mxu2 %vm144_vm0, %v1246_v28  ;;  %v734_v28 = vld [vmem:[#allocation8 + $0x168] sm:$0xff]  ;;  %824 = vmatpush.msrb.mxu1 %v1266_v52 }
 0x2da   :  { %787 = vmatpush.msrb.mxu0 %v1270_v53  ;;  %739 = vmatpush.msrb.mxu3 %v734_v28  ;;  %v730_v52 = vld [vmem:[#allocation8 + $0x148] sm:$0xff] }
 0x2db   :  { %825 = vmatpush.msrb.mxu1 %v1270_v53  ;;  %v729_v53 = vld [vmem:[#allocation8 + $0x140] sm:$0xff] }
 0x2dc   :  { %788 = vmatpush.msrb.mxu0 %v1274_v54 }
 0x2dd   :  { %826 = vmatpush.msrb.mxu1 %v1274_v54  ;;  %v728_v54 = vld [vmem:[#allocation8 + $0x138] sm:$0xff] }
 0x2de   :  { %789 = vmatpush.msrb.mxu0 %v1278_v55 }
 0x2df   :  { %827 = vmatpush.msrb.mxu1 %v1278_v55  ;;  %v727_v55 = vld [vmem:[#allocation8 + $0x130] sm:$0xff] }
 0x2e0   :  { %790 = vmatpush.msrb.mxu0 %v1282_v56 }
 0x2e1   :  { %937 = vmatmul.msk.f32.gmra.mxu2 %vm144_vm0, %v1250_v29  ;;  %v733_v29 = vld [vmem:[#allocation8 + $0x160] sm:$0xff]  ;;  %828 = vmatpush.msrb.mxu1 %v1282_v56  ;;  %v726_v56 = vld [vmem:[#allocation8 + $0x128] sm:$0xff] }
 0x2e2   :  { %740 = vmatpush.msrb.mxu3 %v733_v29  ;;  %791 = vmatpush.msrb.mxu0 %v1286_v58 }
 0x2e3   :  { %829 = vmatpush.msrb.mxu1 %v1286_v58  ;;  %v725_v58 = vld [vmem:[#allocation8 + $0x120] sm:$0xff] }
 0x2e4   :  { %741 = vmatpush.msrb.mxu3 %v732_v49  ;;  %792 = vmatpush.msrb.mxu0 %v1290_v60 }
 0x2e5   :  { %830 = vmatpush.msrb.mxu1 %v1290_v60  ;;  %v724_v60 = vld [vmem:[#allocation8 + $0x118] sm:$0xff] }
 0x2e6   :  { %742 = vmatpush.msrb.mxu3 %v731_v50  ;;  %793 = vmatpush.msrb.mxu0 %v1294_v61 }
 0x2e7   :  { %831 = vmatpush.msrb.mxu1 %v1294_v61  ;;  %v723_v61 = vld [vmem:[#allocation8 + $0x110] sm:$0xff] }
 0x2e8   :  { %743 = vmatpush.msrb.mxu3 %v730_v52  ;;  %794 = vmatpush.msrb.mxu0 %v1298_v62 }
 0x2e9   :  { %832 = vmatpush.msrb.mxu1 %v1298_v62  ;;  %v722_v62 = vld [vmem:[#allocation8 + $0x108] sm:$0xff] }
 0x2ea   :  { %744 = vmatpush.msrb.mxu3 %v729_v53  ;;  %795 = vmatpush.msrb.mxu0 %v1302_v63 }
 0x2eb   :  { %833 = vmatpush.msrb.mxu1 %v1302_v63 }
 0x2ec   :  { %745 = vmatpush.msrb.mxu3 %v728_v54  ;;  %796 = vmatpush.msrb.mxu0 %v1306_v1 }
 0x2ed   :  { %834 = vmatpush.msrb.mxu1 %v1306_v1 }
 0x2ee   :  { %746 = vmatpush.msrb.mxu3 %v727_v55  ;;  %797 = vmatpush.msrb.mxu0 %v1310_v12 }
 0x2ef   :  { %835 = vmatpush.msrb.mxu1 %v1310_v12  ;;  %v721_v12 = vld [vmem:[#allocation8 + $0x100] sm:$0xff] }
 0x2f0   :  { %747 = vmatpush.msrb.mxu3 %v726_v56  ;;  %798 = vmatpush.msrb.mxu0 %v1312_v13 }
 0x2f1   :  { %836 = vmatpush.msrb.mxu1 %v1312_v13 }
 0x2f2   :  { %748 = vmatpush.msrb.mxu3 %v725_v58  ;;  %799 = vmatpush.msrb.mxu0 %v1316_v14 }
 0x2f3   :  { %837 = vmatpush.msrb.mxu1 %v1316_v14 }
 0x2f4   :  { %749 = vmatpush.msrb.mxu3 %v724_v60  ;;  %800 = vmatpush.msrb.mxu0 %v1320_v15 }
 0x2f5   :  { %838 = vmatpush.msrb.mxu1 %v1320_v15 }
 0x2f6   :  { %750 = vmatpush.msrb.mxu3 %v723_v61  ;;  %801 = vmatpush.msrb.mxu0 %v1324_v16 }
 0x2f7   :  { %839 = vmatpush.msrb.mxu1 %v1324_v16 }
 0x2f8   :  { %751 = vmatpush.msrb.mxu3 %v722_v62 }
 0x2fa   :  { %752 = vmatpush.msrb.mxu3 %v721_v12 }
 0x32c   :  { %v559_v63 = vpop.f32.mrf.mxu2  ;;  %v604_v1 = vpop.f32.mrf.mxu3 }
 0x32d   :  { %649 = vmatmul.f32.vlgmr.msra.gmra.mxu0 %v604_v1  ;;  %678 = vmatmul.f32.vlgmr.msra.gmra.mxu1 %v559_v63 }
 0x334   :  { %v562_v13 = vpop.f32.mrf.mxu2  ;;  %v607_v51 = vpop.f32.mrf.mxu3 }
 0x335   :  { %652 = vmatmul.f32.gmra.mxu0 %v607_v51  ;;  %681 = vmatmul.f32.gmra.mxu1 %v562_v13 }
 0x33c   :  { %v565_v14 = vpop.f32.mrf.mxu2  ;;  %v610_v3 = vpop.f32.mrf.mxu3 }
 0x33d   :  { %655 = vmatmul.f32.gmra.mxu0 %v610_v3  ;;  %684 = vmatmul.f32.gmra.mxu1 %v565_v14 }
 0x344   :  { %v568_v17 = vpop.f32.mrf.mxu2  ;;  %v613_v15 = vpop.f32.mrf.mxu3 }
 0x345   :  { %658 = vmatmul.f32.gmra.mxu0 %v613_v15  ;;  %687 = vmatmul.f32.gmra.mxu1 %v568_v17 }
 0x34c   :  { %v708_v18 = vpop.f32.mrf.mxu2 }
 0x34d   :  { %753 = vmatmul.f32.vlgmr.msrb.gmra.mxu3 %v708_v18 }
 0x354   :  { %v711_v19 = vpop.f32.mrf.mxu2 }
 0x355   :  { %756 = vmatmul.f32.gmra.mxu3 %v711_v19 }
 0x35c   :  { %v714_v21 = vpop.f32.mrf.mxu2 }
 0x35d   :  { %759 = vmatmul.f32.gmra.mxu3 %v714_v21 }
 0x364   :  { %v717_v22 = vpop.f32.mrf.mxu2 }
 0x365   :  { %762 = vmatmul.f32.gmra.mxu3 %v717_v22  ;;  %v950_v22 = vld [vmem:[%s1419_s9] ss:$0 sm:$0xff]  ;;  %s1115_s9 = smov [#allocation11]  }
 0x366   :  { %s885_s30 = sshll.u32 %s1115_s9, 4  ;;  %s886_s30 = int_to_ptr.vmem [resolvable:$true] %s885_s30 }
 0x3aa   :  { %v650_v16 = vpop.f32.mrf.mxu0  ;;  %v679_v23 = vpop.f32.mrf.mxu1 }
 0x3ab   :  { %v680_v8 = vadd.f32 %v679_v23, %v650_v16 }
 0x3b2   :  { %v653_v2 = vpop.f32.mrf.mxu0  ;;  %v682_v0 = vpop.f32.mrf.mxu1 }
 0x3b3   :  { %v683_v59 = vadd.f32 %v682_v0, %v653_v2 }
 0x3ba   :  { %v656_v57 = vpop.f32.mrf.mxu0  ;;  %v685_v6 = vpop.f32.mrf.mxu1 }
 0x3bb   :  { %v686_v24 = vadd.f32 %v685_v6, %v656_v57 }
 0x3c2   :  { %v659_v26 = vpop.f32.mrf.mxu0  ;;  %v688_v30 = vpop.f32.mrf.mxu1 }
 0x3c3   :  { %v689_v32 = vadd.f32 %v688_v30, %v659_v26 }
 0x3d0   :  { %v754_v4 = vpop.f32.mrf.mxu3 }
 0x3d1   :  { %v766_v25 = vadd.f32 %v754_v4, %v680_v8  ;;  %v951_v4 = vld [vmem:[%s1420_s10] ss:$0 sm:$0xff] }
 0x3d3   :  { %v773_v33 = vadd.f32 %v949_v10, %v766_v25 }
 0x3d8   :  { %v757_v5 = vpop.f32.mrf.mxu3 }
 0x3d9   :  { %v767_v9 = vadd.f32 %v757_v5, %v683_v59 }
 0x3db   :  { %v774_v31 = vadd.f32 %v949_v10, %v767_v9 }
 0x3dd   :  { %v777_v34 = vadd.f32 %v774_v31, %v773_v33 }
 0x3e0   :  { %v760_v7 = vpop.f32.mrf.mxu3 }
 0x3e1   :  { %v768_v11 = vadd.f32 %v760_v7, %v686_v24 }
 0x3e3   :  { %v775_v35 = vadd.f32 %v949_v10, %v768_v11 }
 0x3e5   :  { %v778_v37 = vadd.f32 %v777_v34, %v775_v35 }
 0x3e8   :  { %v763_v20 = vpop.f32.mrf.mxu3 }
 0x3e9   :  { %v769_v36 = vadd.f32 %v763_v20, %v689_v32 }
 0x3eb   :  { %v776_v38 = vadd.f32 %v949_v10, %v769_v36 }
 0x3ed   :  { %v779_v39 = vadd.f32 %v778_v37, %v776_v38 }
 0x3ef   :  { %v780_v40 = vrot.slane %v779_v39, 4 }
 0x3f1   :  { %v781_v41 = vadd.f32 %v780_v40, %v779_v39 }
 0x3f3   :  { %v782_v27 = vrot.slane %v781_v41, 2 }
 0x3f5   :  { %v783_v42 = vadd.f32 %v782_v27, %v781_v41 }
 0x3f7   :  { %v784_v43 = vrot.slane %v783_v42, 1 }
 0x3f9   :  { %v785_v44 = vadd.f32 %v784_v43, %v783_v42 }
 0x3fb   :  { %802 = vmatmul.f32.vlgmr.msrb.gmra.mxu0 %v785_v44 }
 0x478   :  { %v803_v45 = vpop.f32.mrf.mxu0 }
 0x479   :  { %v806_v46 = vperm.slane %v803_v45, 0 }
 0x47b   :  { %v807_v47 = vsub.f32 %v773_v33, %v806_v46  ;;  %v808_v48 = vsub.f32 %v774_v31, %v806_v46  ;;  %v809_v28 = vsub.f32 %v775_v35, %v806_v46  ;;  %v810_v29 = vsub.f32 %v776_v38, %v806_v46 }
 0x47d   :  { %v811_v49 = vmul.f32 %v807_v47, %v807_v47  ;;  %v812_v50 = vmul.f32 %v808_v48, %v808_v48  ;;  %v813_v52 = vmul.f32 %v809_v28, %v809_v28  ;;  %v814_v54 = vmul.f32 %v810_v29, %v810_v29 }
 0x47f   :  { %v815_v53 = vadd.f32 %v812_v50, %v811_v49 }
 0x481   :  { %v816_v55 = vadd.f32 %v815_v53, %v813_v52 }
 0x483   :  { %v817_v56 = vadd.f32 %v816_v55, %v814_v54 }
 0x485   :  { %v818_v58 = vrot.slane %v817_v56, 4 }
 0x487   :  { %v819_v60 = vadd.f32 %v818_v58, %v817_v56 }
 0x489   :  { %v820_v61 = vrot.slane %v819_v60, 2 }
 0x48b   :  { %v821_v62 = vadd.f32 %v820_v61, %v819_v60 }
 0x48d   :  { %v822_v63 = vrot.slane %v821_v62, 1 }
 0x48f   :  { %v823_v1 = vadd.f32 %v822_v63, %v821_v62 }
 0x491   :  { %840 = vmatmul.f32.vlgmr.msrb.gmra.mxu1 %v823_v1 }
 0x50e   :  { %v841_v12 = vpop.f32.mrf.mxu1 }
 0x50f   :  { %v842_v13 = vadd.f32 1e-05, %v841_v12 }
 0x511   :  { %954 = vrsqrt.f32 %v842_v13  ;;  %vm850_vm6 = vweird.f32 %v842_v13 }
 0x517   :  { %v955_v51 = vpop.eup %954 }
 0x518   :  { %v845_v14 = vmul.f32 %v955_v51, %v842_v13  ;;  %vm851_vm5 = vweird.f32 %v955_v51 }
 0x519   :  { %vm852_vm7 = vmor %vm850_vm6, %vm851_vm5 }
 0x51a   :  { %v846_v3 = vmul.f32 %v955_v51, %v845_v14 }
 0x51c   :  { %v847_v17 = vmul.f32 0.5, %v846_v3 }
 0x51e   :  { %v848_v15 = vsub.f32 1.5, %v847_v17 }
 0x520   :  { %v849_v18 = vmul.f32 %v955_v51, %v848_v15 }
 0x522   :  { %v853_v19 = vsel %vm852_vm7, %v955_v51, %v849_v18 }
 0x523   :  { %v854_v21 = vperm.slane %v853_v19, 0 }
 0x525   :  { %v855_v16 = vmul.f32 %v854_v21, %v807_v47  ;;  %v856_v23 = vmul.f32 %v854_v21, %v808_v48  ;;  %v857_v2 = vmul.f32 %v854_v21, %v809_v28  ;;  %v858_v0 = vmul.f32 %v854_v21, %v810_v29 }
 0x527   :  { %v862_v5 = vmul.f32 %v950_v22, %v855_v16  ;;  %v863_v57 = vmul.f32 %v950_v22, %v856_v23  ;;  %v864_v6 = vmul.f32 %v950_v22, %v857_v2  ;;  %v865_v59 = vmul.f32 %v950_v22, %v858_v0 }
 0x529   :  { %v869_v7 = vadd.f32 %v951_v4, %v862_v5  ;;  %v870_v8 = vadd.f32 %v951_v4, %v863_v57  ;;  %v871_v24 = vadd.f32 %v951_v4, %v864_v6  ;;  %v872_v9 = vadd.f32 %v951_v4, %v865_v59 }
 0x52b   :  { %v873_v25 = vmax.f32 %v869_v7, 0.0  ;;  %v874_v10 = vmax.f32 %v870_v8, 0.0  ;;  %v875_v11 = vmax.f32 %v871_v24, 0.0  ;;  %v876_v26 = vmax.f32 %v872_v9, 0.0 }
 0x52d   :  { %877 = vst [vmem:[#allocation11] sm:$0xff] %v873_v25 }
 0x52e   :  { %878 = vst [vmem:[#allocation11 + $0x8] sm:$0xff] %v874_v10 }
 0x52f   :  { %879 = vst [vmem:[#allocation11 + $0x10] sm:$0xff] %v875_v11 }
 0x530   :  { %880 = vst [vmem:[#allocation11 + $0x18] sm:$0xff] %v876_v26 }
 0x531   :  { %893 = dma.vmem_to_hbm [thread:$0]  %s886_s30, 512, %s888_s12, [#allocation4], %s1109_s25, %s1109_s25, %s1110_s26  }
 0x532   :  { %1106 = dma.done.wait [#allocation4], 512  }
 0x533   :  { %1107 = vsyncadd [#allocation4], 4294966784 }
 0x534   :  { %898 = vsyncpa [#allocation3], 1 }
 0x535   :  { %899 = vsyncpa [#allocation6], 1 }
 0x536   :  { %900 = vsyncpa [#allocation9], 1 }
 0x537   :  { %901 = vsyncpa [#allocation4], 1 }

</bundles_post_ra>
